<compile_context>
chip_gen: v6e
topology: v6e:2x2x1
jax: 0.10.0
libtpu: 0.0.40
codegen_flags: <defaults>
</compile_context>

<pallas_src>
import jax
import jax.numpy as jnp
from jax.experimental import pallas as pl
from jax.experimental.pallas import tpu as pltpu


def _round_up(x, m):
    return ((x + m - 1) // m) * m


def _pick_tile(dim, max_tile):
    """Largest multiple-of-128 tile <= max_tile that divides round_up(dim, 128).

    Dividing the 128-padded dim exactly avoids padding the (persistent) weight
    beyond lane alignment, i.e. no extra HBM bytes streamed every call.
    """
    padded = _round_up(dim, 128)
    best = 128
    t = 256
    while t <= min(max_tile, padded):
        if padded % t == 0:
            best = t
        t += 128
    return best, padded


def _linear_kernel(x_ref, w_ref, b_ref, o_ref, acc_ref):
    # x_ref: (tm, tk)   w_ref: (tk, tn)  [weight already transposed to K,N]
    # b_ref: (1, tn)    o_ref: (tm, tn)  acc_ref: (tm, tn) f32 scratch
    k = pl.program_id(2)

    @pl.when(k == 0)
    def _():
        # Initialize the accumulator from the broadcast bias (no separate
        # epilogue add).
        acc_ref[...] = jnp.broadcast_to(
            b_ref[...].astype(jnp.float32), acc_ref.shape
        )

    # Plain (tm,tk) @ (tk,tn): contracts x's last dim with W's first dim,
    # MXU-native, lane-dense in N.
    acc_ref[...] += jnp.dot(
        x_ref[...], w_ref[...], preferred_element_type=jnp.float32
    )

    @pl.when(k == pl.num_programs(2) - 1)
    def _():
        o_ref[...] = acc_ref[...].astype(o_ref.dtype)


def prepare_decoder_params(weight, bias, *, tn_max=512, tk_max=512):
    """One-time (per model) weight/bias preparation — keep OUT of the hot path.

    weight: [out_dim, in_dim] (PyTorch convention)
    bias:   [out_dim]
    Returns a dict with the weight transposed to [K, N] and both padded to
    lane-aligned tile boundaries.
    """
    out_dim, in_dim = weight.shape
    tn, np_ = _pick_tile(out_dim, tn_max)
    tk, kp = _pick_tile(in_dim, tk_max)

    w_kn = jnp.transpose(weight)  # [K, N] — one-time transpose at setup.
    if (kp != in_dim) or (np_ != out_dim):
        w_kn = jnp.pad(w_kn, ((0, kp - in_dim), (0, np_ - out_dim)))
    b_p = bias if np_ == out_dim else jnp.pad(bias, (0, np_ - out_dim))
    b_p = b_p.reshape(1, np_)

    return dict(
        w_kn=w_kn, b=b_p, in_dim=in_dim, out_dim=out_dim,
        tn=tn, tk=tk, kp=kp, np_=np_,
    )


def classification_decoder_apply(
    x, params, *, tm_max=2048, vmem_budget_bytes=20 * 1024 * 1024
):
    """y = x @ W^T + b using pre-prepared params (see prepare_decoder_params)."""
    in_dim, out_dim = params["in_dim"], params["out_dim"]
    tn, tk, kp, np_ = params["tn"], params["tk"], params["kp"], params["np_"]
    w_kn, b_p = params["w_kn"], params["b"]

    assert x.shape[-1] == in_dim
    lead = x.shape[:-1]
    x2d = x.reshape(-1, in_dim)  # (M, K)
    m = x2d.shape[0]

    bx = x2d.dtype.itemsize
    bw = w_kn.dtype.itemsize
    bo = x2d.dtype.itemsize      # output keeps x's dtype
    bb = b_p.dtype.itemsize

    # --- choose tm as large as the VMEM budget allows -----------------------
    # Weight HBM traffic is ceil(M/tm) * K * N, so a bigger tm directly cuts
    # the dominant HBM stream for LM-head-sized weights.
    fixed = 2 * tk * tn * bw + 2 * tn * bb              # W + bias double-buffers
    per_row = 2 * tk * bx + 2 * tn * bo + tn * 4        # x dbuf + out dbuf + f32 acc
    tm_cap = max(8, ((max(vmem_budget_bytes - fixed, 8 * per_row)) // per_row) // 8 * 8)
    tm_cap = min(tm_cap, tm_max)
    num_m = -(-max(m, 1) // tm_cap)                      # ceil-div
    tm = _round_up(-(-m // num_m), 8)                    # balanced tiles, 8-aligned
    mp = tm * num_m

    # Per-call zero padding of the activation only (weight/bias padded at init).
    if (mp != m) or (kp != in_dim):
        x_p = jnp.pad(x2d, ((0, mp - m), (0, kp - in_dim)))
    else:
        x_p = x2d

    grid = (mp // tm, np_ // tn, kp // tk)

    footprint = (
        2 * tm * tk * bx + 2 * tk * tn * bw + 2 * tn * bb
        + 2 * tm * tn * bo + tm * tn * 4
    )
    # Only raise the scoped-VMEM limit when we actually exceed the smallest
    # (v5e) default; stays well under v7x's 64 MiB/TC physical VMEM.
    vmem_limit = int(footprint + (4 << 20)) if footprint > (14 << 20) else None

    cost = pl.CostEstimate(
        flops=2 * mp * np_ * kp,
        transcendentals=0,
        bytes_accessed=int(
            mp * kp * bx + grid[0] * kp * np_ * bw + mp * np_ * bo + np_ * bb
        ),
    )

    out = pl.pallas_call(
        _linear_kernel,
        out_shape=jax.ShapeDtypeStruct((mp, np_), x.dtype),
        grid_spec=pltpu.PrefetchScalarGridSpec(
            num_scalar_prefetch=0,
            grid=grid,
            in_specs=[
                pl.BlockSpec((tm, tk), lambda i, j, k: (i, k)),   # x   (M, K)
                pl.BlockSpec((tk, tn), lambda i, j, k: (k, j)),   # W^T (K, N)
                pl.BlockSpec((1, tn), lambda i, j, k: (0, j)),    # b   (1, N)
            ],
            out_specs=pl.BlockSpec((tm, tn), lambda i, j, k: (i, j)),
            scratch_shapes=[pltpu.VMEM((tm, tn), jnp.float32)],
        ),
        compiler_params=pltpu.CompilerParams(
            dimension_semantics=("parallel", "parallel", "arbitrary"),
            vmem_limit_bytes=vmem_limit,
        ),
        cost_estimate=cost,
    )(x_p, w_kn, b_p)

    if (mp != m) or (np_ != out_dim):
        out = out[:m, :out_dim]
    return out.reshape(*lead, out_dim)


def classification_decoder(x, weight, bias, **kwargs):
    """One-shot convenience wrapper (prep + apply). For repeated calls, run
    prepare_decoder_params once and reuse the result with
    classification_decoder_apply so the weight transpose/pad stays out of the
    hot path."""
    params = prepare_decoder_params(weight, bias)
    return classification_decoder_apply(x, params, **kwargs)


if __name__ == "__main__":
    key = jax.random.PRNGKey(0)
    k_x, k_w, k_b = jax.random.split(key, 3)

    batch, seq, in_dim, out_dim = 2, 8, 32, 16

    # Deterministic parameter init (PyTorch-style uniform(-1/sqrt(in), 1/sqrt(in))).
    bound = 1.0 / jnp.sqrt(jnp.float32(in_dim))
    weight = jax.random.uniform(k_w, (out_dim, in_dim), jnp.float32, -bound, bound)
    bias = jax.random.uniform(k_b, (out_dim,), jnp.float32, -bound, bound)

    x = jax.random.normal(k_x, (batch, seq, in_dim), jnp.float32)

    # Hoist the one-time weight transpose/pad out of the per-call path.
    params = prepare_decoder_params(weight, bias)
    y = classification_decoder_apply(x, params)
    jax.block_until_ready(y)

    # Reference check against plain JAX.
    y_ref = x @ weight.T + bias
    assert y.shape == (batch, seq, out_dim)
    assert jnp.allclose(y, y_ref, atol=1e-5, rtol=1e-5)

    print("KERNEL_OK")
</pallas_src>

<mosaic_0001>
module attributes {stable_mosaic.version = 11 : i64} {
  func.func @_linear_kernel(%arg0: i32, %arg1: i32, %arg2: i32, %arg3: memref<16x128xf32, #tpu.memory_space<vmem>>, %arg4: memref<128x128xf32, #tpu.memory_space<vmem>>, %arg5: memref<1x128xf32, #tpu.memory_space<vmem>>, %arg6: memref<16x128xf32, #tpu.memory_space<vmem>>, %arg7: memref<16x128xf32, #tpu.memory_space<vmem>>) attributes {dimension_semantics = [#tpu.dimension_semantics<parallel>, #tpu.dimension_semantics<parallel>, #tpu.dimension_semantics<arbitrary>], iteration_bounds = array<i64: 1, 1, 1>, scalar_prefetch = 0 : i64, scratch_operands = 1 : i64, tpu.core_type = #tpu.core_type<tc>, window_params = [{transform_indices = @transform_0, window_bounds = array<i64: 16, 128>}, {transform_indices = @transform_1, window_bounds = array<i64: 128, 128>}, {transform_indices = @transform_2, window_bounds = array<i64: 1, 128>}, {transform_indices = @transform_3, window_bounds = array<i64: 16, 128>}]} {
    %c0_i32 = arith.constant 0 : i32
    %0 = arith.cmpi eq, %arg2, %c0_i32 : i32
    %1 = arith.extui %0 : i1 to i32
    %c0_i32_0 = arith.constant 0 : i32
    %2 = arith.cmpi ne, %1, %c0_i32_0 : i32
    scf.if %2 {
      %c0_10 = arith.constant 0 : index
      %c0_11 = arith.constant 0 : index
      %12 = vector.load %arg5[%c0_10, %c0_11] : memref<1x128xf32, #tpu.memory_space<vmem>>, vector<1x128xf32>
      %13 = vector.shape_cast %12 : vector<1x128xf32> to vector<1x128xf32>
      %14 = vector.broadcast %13 : vector<1x128xf32> to vector<16x128xf32>
      %c0_12 = arith.constant 0 : index
      %c0_13 = arith.constant 0 : index
      %15 = vector.load %arg7[%c0_12, %c0_13] : memref<16x128xf32, #tpu.memory_space<vmem>>, vector<16x128xf32>
      tpu.vector_store %arg7[%c0_12, %c0_13], %14 {strides = array<i32>} : memref<16x128xf32, #tpu.memory_space<vmem>>, vector<16x128xf32>,
    } else {
    }
    %c0 = arith.constant 0 : index
    %c0_1 = arith.constant 0 : index
    %3 = vector.load %arg7[%c0, %c0_1] : memref<16x128xf32, #tpu.memory_space<vmem>>, vector<16x128xf32>
    %c0_2 = arith.constant 0 : index
    %c0_3 = arith.constant 0 : index
    %4 = vector.load %arg3[%c0_2, %c0_3] : memref<16x128xf32, #tpu.memory_space<vmem>>, vector<16x128xf32>
    %c0_4 = arith.constant 0 : index
    %c0_5 = arith.constant 0 : index
    %5 = vector.load %arg4[%c0_4, %c0_5] : memref<128x128xf32, #tpu.memory_space<vmem>>, vector<128x128xf32>
    %cst = arith.constant dense<0.000000e+00> : vector<16x128xf32>
    %6 = tpu.matmul %4, %5, %cst {dimension_numbers = #tpu.dot_dimension_numbers<[1], [0], [0], [1], [0, 0, 1, 1], [], []>} : vector<16x128xf32>, vector<128x128xf32>, vector<16x128xf32> -> vector<16x128xf32>
    %7 = arith.addf %3, %6 : vector<16x128xf32>
    %c0_6 = arith.constant 0 : index
    %c0_7 = arith.constant 0 : index
    %8 = vector.load %arg7[%c0_6, %c0_7] : memref<16x128xf32, #tpu.memory_space<vmem>>, vector<16x128xf32>
    tpu.vector_store %arg7[%c0_6, %c0_7], %7 {strides = array<i32>} : memref<16x128xf32, #tpu.memory_space<vmem>>, vector<16x128xf32>,
    %c0_i32_8 = arith.constant 0 : i32
    %9 = arith.cmpi eq, %arg2, %c0_i32_8 : i32
    %10 = arith.extui %9 : i1 to i32
    %c0_i32_9 = arith.constant 0 : i32
    %11 = arith.cmpi ne, %10, %c0_i32_9 : i32
    scf.if %11 {
      %c0_10 = arith.constant 0 : index
      %c0_11 = arith.constant 0 : index
      %12 = vector.load %arg7[%c0_10, %c0_11] : memref<16x128xf32, #tpu.memory_space<vmem>>, vector<16x128xf32>
      %c0_12 = arith.constant 0 : index
      %c0_13 = arith.constant 0 : index
      %13 = vector.load %arg6[%c0_12, %c0_13] : memref<16x128xf32, #tpu.memory_space<vmem>>, vector<16x128xf32>
      tpu.vector_store %arg6[%c0_12, %c0_13], %12 {strides = array<i32>} : memref<16x128xf32, #tpu.memory_space<vmem>>, vector<16x128xf32>,
    } else {
    }
    return
  }
  func.func @transform_0(%arg0: i32, %arg1: i32, %arg2: i32) -> (i32, i32) {
    %c0_i32 = arith.constant 0 : i32
    return %arg0, %arg2 : i32, i32
  }
  func.func @transform_1(%arg0: i32, %arg1: i32, %arg2: i32) -> (i32, i32) {
    %c0_i32 = arith.constant 0 : i32
    return %arg2, %arg1 : i32, i32
  }
  func.func @transform_2(%arg0: i32, %arg1: i32, %arg2: i32) -> (i32, i32) {
    %c0_i32 = arith.constant 0 : i32
    %c0_i32_0 = arith.constant 0 : i32
    return %c0_i32, %arg1 : i32, i32
  }
  func.func @transform_3(%arg0: i32, %arg1: i32, %arg2: i32) -> (i32, i32) {
    %c0_i32 = arith.constant 0 : i32
    return %arg0, %arg1 : i32, i32
  }
}

</mosaic_0001>

<bundles_post_ra>
// kernel: tpu_custom_call.1
= control target key start
LH: loop header
LB: loop body
LE: loop exit
PB: predicated region body
PF: predicated region fallthrough
CT: control target
= control target key end

     0   :  { %8 = vsyncpa [#allocation4], 0  ;;  %s351_s0 = inlined_call_operand.hbm [shape: f32[16,128], index: 0, kind: input, shape index: {}]   ;;  %s352_s1 = inlined_call_operand.hbm [shape: f32[128,128], index: 1, kind: input, shape index: {}]   ;;  %s353_s2 = inlined_call_operand.vmem [shape: f32[1,128], index: 2, kind: input, shape index: {}]   ;;  %s354_s3 = inlined_call_operand.hbm [shape: f32[16,128], index: 3, kind: output, shape index: {}]  }
   0x1   :  { %9 = vsyncpa [#allocation7], 0 }
   0x2   :  { %10 = vsyncpa [#allocation5], 0  ;;  %s305_s12 = smov [#allocation3]  }
   0x3   :  { %s16_s13 = sshll.u32 %s305_s12, 4  ;;  %s17_s13 = int_to_ptr.vmem [resolvable:$true] %s16_s13 }
   0x4   :  { %s247_s14 = scalar_lea.vmem %s17_s13, 256  ;;  %p252_p1 = scmp.lt.s32.totalorder %s17_s13, %s17_s13 }
   0x5   :  { %p248_p0 = scmp.ne.s32.totalorder %s17_s13, %s247_s14  ;;  %p253_p2 = scmp.lt.s32.totalorder %s247_s14, %s247_s14 }
   0x7   :  { %p254_p3 = por %p253_p2, %p252_p1 }
   0x9   :  { %p255_p4 = pnand %p254_p3, %p248_p0 }
   0xb   :  { %258 = shalt.err (!%p255_p4)
}
   0xc   :  { %s306_s15 = smov 128   ;;  %s307_s16 = smov 8  }
   0xd   :  { %22 = dma.hbm_to_vmem [thread:$0]  %s351_s0, 256, %s17_s13, [#allocation4], %s306_s15, %s306_s15, %s307_s16  }
   0xe   :  { %s308_s19 = smov [#allocation6]  }
   0xf   :  { %s28_s20 = sshll.u32 %s308_s19, 4  ;;  %s29_s20 = int_to_ptr.vmem [resolvable:$true] %s28_s20 }
  0x10   :  { %s267_s21 = scalar_lea.vmem %s29_s20, 2048  ;;  %p272_p6 = scmp.lt.s32.totalorder %s29_s20, %s29_s20 }
  0x11   :  { %p268_p5 = scmp.ne.s32.totalorder %s29_s20, %s267_s21  ;;  %p273_p7 = scmp.lt.s32.totalorder %s267_s21, %s267_s21 }
  0x13   :  { %p274_p8 = por %p273_p7, %p272_p6 }
  0x15   :  { %p275_p9 = pnand %p274_p8, %p268_p5 }
  0x17   :  { %278 = shalt.err (!%p275_p9)
}
  0x18   :  { %34 = dma.hbm_to_vmem [thread:$0]  %s352_s1, 2048, %s29_s20, [#allocation7], %s306_s15, %s306_s15, %s307_s16  }
  0x19   :  { %299 = dma.done.wait [#allocation4], 256  }
  0x1a   :  { %300 = vsyncadd [#allocation4], 4294967040 }
  0x1b   :  { %301 = dma.done.wait [#allocation7], 2048  }
  0x1c   :  { %302 = vsyncadd [#allocation7], 4294965248  ;;  %v75_v0 = vld [vmem:[#allocation6 + $0x78] sm:$0xff]  ;;  %v74_v1 = vld [vmem:[#allocation6 + $0x70] sm:$0xff]  ;;  %s309_s24 = smov [#allocation8]  }
  0x1d   :  { %199 = vmatprep.subr.mxu0 %v75_v0  ;;  %v73_v2 = vld [vmem:[#allocation6 + $0x68] sm:$0xff]  ;;  %v72_v3 = vld [vmem:[#allocation6 + $0x60] sm:$0xff]  ;;  %v58_v4 = vld [vmem:[#allocation3] sm:$0xff]  ;;  %s167_s25 = sshll.u32 %s309_s24, 4  ;;  %s168_s25 = int_to_ptr.vmem [resolvable:$true] %s167_s25 }
  0x1e   :  { %200 = vmatpush3.msra.mxu0 %v75_v0  ;;  %v71_v5 = vld [vmem:[#allocation6 + $0x58] sm:$0xff]  ;;  %231 = vmatprep.mubr.f32.mxu0 %v58_v4  ;;  %v70_v6 = vld [vmem:[#allocation6 + $0x50] sm:$0xff]  ;;  %v69_v7 = vld [vmem:[#allocation6 + $0x48] sm:$0xff]  ;;  %s279_s26 = scalar_lea.vmem %s168_s25, 256  ;;  %p284_p11 = scmp.lt.s32.totalorder %s168_s25, %s168_s25 }
  0x1f   :  { %201 = vmatprep.subr.mxu0 %v74_v1  ;;  %v68_v8 = vld [vmem:[#allocation6 + $0x40] sm:$0xff]  ;;  %v67_v9 = vld [vmem:[#allocation6 + $0x38] sm:$0xff]  ;;  %v66_v10 = vld [vmem:[#allocation6 + $0x30] sm:$0xff]  ;;  %p280_p10 = scmp.ne.s32.totalorder %s168_s25, %s279_s26  ;;  %p285_p12 = scmp.lt.s32.totalorder %s279_s26, %s279_s26 }
  0x20   :  { %202 = vmatpush3.msra.mxu0 %v74_v1  ;;  %v65_v11 = vld [vmem:[#allocation6 + $0x28] sm:$0xff]  ;;  %v64_v12 = vld [vmem:[#allocation6 + $0x20] sm:$0xff]  ;;  %v63_v13 = vld [vmem:[#allocation6 + $0x18] sm:$0xff] }
  0x21   :  { %203 = vmatprep.subr.mxu0 %v73_v2  ;;  %v62_v14 = vld [vmem:[#allocation6 + $0x10] sm:$0xff]  ;;  %v61_v15 = vld [vmem:[#allocation6 + $0x8] sm:$0xff]  ;;  %v60_v16 = vld [vmem:[#allocation6] sm:$0xff]  ;;  %p286_p13 = por %p285_p12, %p284_p11 }
  0x22   :  { %204 = vmatpush3.msra.mxu0 %v73_v2  ;;  %v59_v17 = vld [vmem:[#allocation3 + $0x8] sm:$0xff]  ;;  %v180_v18 = vld [vmem:[%s353_s2] ss:$0 sm:$0xff] }
  0x23   :  { %205 = vmatprep.subr.mxu0 %v72_v3  ;;  %p287_p0 = pnand %p286_p13, %p280_p10 }
  0x24   :  { %206 = vmatpush3.msra.mxu0 %v72_v3 }
  0x25   :  { %207 = vmatprep.subr.mxu0 %v71_v5 }
  0x26   :  { %208 = vmatpush3.msra.mxu0 %v71_v5 }
  0x27   :  { %209 = vmatprep.subr.mxu0 %v70_v6 }
  0x28   :  { %210 = vmatpush3.msra.mxu0 %v70_v6 }
  0x29   :  { %211 = vmatprep.subr.mxu0 %v69_v7 }
  0x2a   :  { %212 = vmatpush3.msra.mxu0 %v69_v7 }
  0x2b   :  { %213 = vmatprep.subr.mxu0 %v68_v8 }
  0x2c   :  { %214 = vmatpush3.msra.mxu0 %v68_v8 }
  0x2d   :  { %215 = vmatprep.subr.mxu0 %v67_v9 }
  0x2e   :  { %216 = vmatpush3.msra.mxu0 %v67_v9 }
  0x2f   :  { %217 = vmatprep.subr.mxu0 %v66_v10 }
  0x30   :  { %218 = vmatpush3.msra.mxu0 %v66_v10 }
  0x31   :  { %219 = vmatprep.subr.mxu0 %v65_v11 }
  0x32   :  { %220 = vmatpush3.msra.mxu0 %v65_v11 }
  0x33   :  { %221 = vmatprep.subr.mxu0 %v64_v12 }
  0x34   :  { %222 = vmatpush3.msra.mxu0 %v64_v12 }
  0x35   :  { %223 = vmatprep.subr.mxu0 %v63_v13 }
  0x36   :  { %224 = vmatpush3.msra.mxu0 %v63_v13 }
  0x37   :  { %225 = vmatprep.subr.mxu0 %v62_v14 }
  0x38   :  { %226 = vmatpush3.msra.mxu0 %v62_v14 }
  0x39   :  { %227 = vmatprep.subr.mxu0 %v61_v15 }
  0x3a   :  { %228 = vmatpush3.msra.mxu0 %v61_v15 }
  0x3b   :  { %229 = vmatprep.subr.mxu0 %v60_v16 }
  0x3c   :  { %230 = vmatpush3.msra.mxu0 %v60_v16 }
  0x3d   :  { %232 = vmatmul.mubr.f32.vlgmr.msra.gmra.mxu0 %v59_v17 }
  0xfd   :  { %v233_v19 = vpop.f32.mrf.mxu0 }
  0xfe   :  { %v152_v20 = vadd.f32 %v233_v19, %v180_v18 }
  0xff   :  { %v142_v21 = vpop.f32.mrf.mxu0 }
 0x100   :  { %161 = vst [vmem:[#allocation8 + $0x8] sm:$0xff] %v152_v20  ;;  %v151_v22 = vadd.f32 %v180_v18, %v142_v21 }
 0x102   :  { %160 = vst [vmem:[#allocation8] sm:$0xff] %v151_v22 }
 0x103   :  { %290 = shalt.err (!%p287_p0)
}
 0x104   :  { %173 = dma.vmem_to_hbm [thread:$0]  %s168_s25, 256, %s354_s3, [#allocation5], %s306_s15, %s306_s15, %s307_s16  }
 0x105   :  { %303 = dma.done.wait [#allocation5], 256  }
 0x106   :  { %304 = vsyncadd [#allocation5], 4294967040 }
 0x107   :  { %177 = vsyncpa [#allocation4], 1 }
 0x108   :  { %178 = vsyncpa [#allocation7], 1 }
 0x109   :  { %179 = vsyncpa [#allocation5], 1 }

</bundles_post_ra>
